<compile_context>
chip_gen: v6e
topology: v6e:2x2x1
jax: 0.10.0
libtpu: 0.0.40
codegen_flags: <defaults>
</compile_context>

<pallas_src>
import jax
import jax.numpy as jnp
import numpy as np
from jax import lax
from jax.experimental import pallas as pl
from jax.experimental.pallas import tpu as pltpu

N_COS = 64
LANE = 128


def _round_up(n, m):
    return ((n + m - 1) // m) * m


def iqn_kernel(x_ref, taus_ref, pis_ref,
               w_head_ref, b_head_ref,
               w_cos_ref, b_cos_ref,
               w1_ref, b1_ref,
               w2t_ref, b2_ref,
               out_ref):
    # Rows = one tile of the flattened (batch * num_tau) axis; the wrapper
    # already repeated/flattened inputs so no in-kernel reshapes are needed.
    # Weights are bf16 MXU operands; accumulation is f32.

    # h = relu(x @ Wh + bh)                                   (TR, Lp) f32
    h = jnp.maximum(
        jnp.dot(x_ref[...], w_head_ref[...],
                preferred_element_type=jnp.float32) + b_head_ref[...], 0.0)

    # cos features cos(tau * pi * k), f32 on the EUP          (TR, n_cos)
    cos = jnp.cos(taus_ref[...] * pis_ref[...])

    # cos_x = relu(cos @ Wc + bc)                             (TR, Lp) f32
    cos_x = jnp.maximum(
        jnp.dot(cos.astype(jnp.bfloat16), w_cos_ref[...],
                preferred_element_type=jnp.float32) + b_cos_ref[...], 0.0)

    # elementwise mix in f32 (rows already aligned), cast once for the MXU
    mix = (h * cos_x).astype(jnp.bfloat16)

    # f1 = relu(mix @ W1 + b1)                                (TR, Lp) f32
    f1 = jnp.maximum(
        jnp.dot(mix, w1_ref[...],
                preferred_element_type=jnp.float32) + b1_ref[...], 0.0)

    # Transposed final layer: (1, Lp) . (TR, Lp)^T -> (1, TR), lane-dense.
    q = lax.dot_general(
        w2t_ref[...], f1.astype(jnp.bfloat16),
        dimension_numbers=(((1,), (1,)), ((), ())),
        preferred_element_type=jnp.float32)
    out_ref[...] = q + b2_ref[...]          # (1,1) broadcasts along lanes


def init_params(key, state_size, action_size, layer_size):
    """Logical (unpadded) f32 params; PyTorch Linear init U(-1/sqrt(fan_in), ...)."""
    def linear(k, fan_in, fan_out):
        kw, kb = jax.random.split(k)
        bound = 1.0 / np.sqrt(fan_in)
        w = jax.random.uniform(kw, (fan_in, fan_out), jnp.float32, -bound, bound)
        b = jax.random.uniform(kb, (1, fan_out), jnp.float32, -bound, bound)
        return w, b

    k0, k1, k2, k3 = jax.random.split(key, 4)
    w_head, b_head = linear(k0, state_size + action_size, layer_size)
    w_cos, b_cos = linear(k1, N_COS, layer_size)
    w1, b1 = linear(k2, layer_size, layer_size)
    w2, b2 = linear(k3, layer_size, 1)
    pis = (np.pi * jnp.arange(1, N_COS + 1, dtype=jnp.float32)).reshape(1, N_COS)
    return dict(pis=pis, w_head=w_head, b_head=b_head, w_cos=w_cos,
                b_cos=b_cos, w1=w1, b1=b1, w2=w2, b2=b2)


def _pad2(x, rows, cols):
    return jnp.pad(x, ((0, rows - x.shape[0]), (0, cols - x.shape[1])))


def pad_params(params):
    """Zero-pad the head K dim to a multiple of 16 and the hidden width to a
    multiple of 128; store weights bf16 (MXU operands), biases f32.  Exact:
    padded weights/biases are zero so padded units stay identically 0."""
    in_dim = params["w_head"].shape[0]
    in_pad = _round_up(in_dim, 16)
    L = params["w1"].shape[0]
    Lp = _round_up(L, LANE)
    bf16 = jnp.bfloat16
    return dict(
        pis=params["pis"],                                     # (1, n_cos) f32
        w_head=_pad2(params["w_head"], in_pad, Lp).astype(bf16),
        b_head=_pad2(params["b_head"], 1, Lp),
        w_cos=_pad2(params["w_cos"], N_COS, Lp).astype(bf16),
        b_cos=_pad2(params["b_cos"], 1, Lp),
        w1=_pad2(params["w1"], Lp, Lp).astype(bf16),
        b1=_pad2(params["b1"], 1, Lp),
        w2t=_pad2(params["w2"], Lp, 1).T.astype(bf16),          # (1, Lp)
        b2=params["b2"].astype(jnp.float32),                    # (1, 1)
    )


def iqn_forward(padded, inputs, action, taus, *, tile_rows=None):
    """Returns (quantiles (B, num_tau, 1), taus (B, num_tau, 1))."""
    B, T = taus.shape
    R = B * T
    x = jnp.concatenate([inputs, action], axis=1).astype(jnp.float32)
    in_dim = x.shape[1]
    in_pad = padded["w_head"].shape[0]
    n_cos = padded["pis"].shape[1]

    # Flatten the (batch, tau) structure once, wrapper-side; pad the head
    # matmul's K dim; ship x as bf16 (it is only ever an MXU operand).
    x_rep = jnp.repeat(x, T, axis=0)                       # (R, in_dim)
    if in_pad > in_dim:
        x_rep = jnp.pad(x_rep, ((0, 0), (0, in_pad - in_dim)))
    x_rep = x_rep.astype(jnp.bfloat16)
    taus_flat = taus.reshape(R, 1).astype(jnp.float32)     # (R, 1)

    if tile_rows is None:
        r16 = _round_up(R, 16)          # sublane-pair multiple for bf16 rows
        if r16 <= 1024:
            tile_rows = r16             # single grid step, no 128-row waste
        else:
            # >= 2 grid steps (v7x megacore), row blocks a multiple of 128,
            # capped at 2048 rows (~5 MiB of f32 intermediates -> large VMEM
            # headroom on v5e/v6e/v7x).
            tile_rows = min(2048, _round_up(pl.cdiv(r16, 2), LANE))
    r_pad = pl.cdiv(R, tile_rows) * tile_rows
    if r_pad != R:
        x_rep = jnp.pad(x_rep, ((0, r_pad - R), (0, 0)))
        taus_flat = jnp.pad(taus_flat, ((0, r_pad - R), (0, 0)))

    grid = (r_pad // tile_rows,)

    def row_spec(cols):                 # pipelined activation tiles
        return pl.BlockSpec((tile_rows, cols), lambda i: (i, 0))

    def resident(shape):                # weights/biases pinned VMEM-resident
        return pl.BlockSpec(shape, lambda i: (0, 0))

    out = pl.pallas_call(
        iqn_kernel,
        out_shape=jax.ShapeDtypeStruct((1, r_pad), jnp.float32),
        grid_spec=pltpu.PrefetchScalarGridSpec(
            num_scalar_prefetch=0,
            grid=grid,
            in_specs=[
                row_spec(in_pad),                           # x (pre-repeated, bf16)
                row_spec(1),                                # taus (flattened, f32)
                resident((1, n_cos)),                       # pis
                resident(padded["w_head"].shape), resident(padded["b_head"].shape),
                resident(padded["w_cos"].shape), resident(padded["b_cos"].shape),
                resident(padded["w1"].shape), resident(padded["b1"].shape),
                resident(padded["w2t"].shape), resident(padded["b2"].shape),
            ],
            # Lane-dense output: each step stores a (1, tile_rows) slab.
            out_specs=pl.BlockSpec((1, tile_rows), lambda i: (0, i)),
        ),
        compiler_params=pltpu.CompilerParams(
            dimension_semantics=("parallel",),
            vmem_limit_bytes=32 * 1024 * 1024,
        ),
    )(x_rep, taus_flat, padded["pis"],
      padded["w_head"], padded["b_head"],
      padded["w_cos"], padded["b_cos"],
      padded["w1"], padded["b1"],
      padded["w2t"], padded["b2"])

    quantiles = out.reshape(r_pad)[:R].reshape(B, T, 1)
    return quantiles, taus[..., None]


def iqn_reference(params, inputs, action, taus):
    """Pure-JAX f32 reference identical to the PyTorch forward semantics."""
    B, T = taus.shape
    L = params["w_head"].shape[1]
    n_cos = params["pis"].shape[1]
    x = jnp.concatenate([inputs, action], axis=1)
    h = jax.nn.relu(x @ params["w_head"] + params["b_head"])
    cos = jnp.cos(taus[:, :, None] * params["pis"][None, :, :]).reshape(B * T, n_cos)
    cos_x = jax.nn.relu(cos @ params["w_cos"] + params["b_cos"]).reshape(B, T, L)
    mix = (h[:, None, :] * cos_x).reshape(B * T, L)
    f1 = jax.nn.relu(mix @ params["w1"] + params["b1"])
    out = f1 @ params["w2"] + params["b2"]
    return out.reshape(B, T, 1), taus[..., None]


if __name__ == "__main__":
    # Small shapes consistent with the module: vector state, vector action.
    state_size, action_size, layer_size = 16, 4, 32
    batch_size, num_tau = 2, 8

    key = jax.random.PRNGKey(0)
    k_params, k_in, k_act, k_tau = jax.random.split(key, 4)

    params = init_params(k_params, state_size, action_size, layer_size)
    padded = pad_params(params)

    inputs = jax.random.normal(k_in, (batch_size, state_size), jnp.float32)
    action = jax.random.normal(k_act, (batch_size, action_size), jnp.float32)
    # taus ~ U[0,1) (torch.rand equivalent), sampled deterministically here.
    taus = jax.random.uniform(k_tau, (batch_size, num_tau), jnp.float32)

    quantiles, taus_out = iqn_forward(padded, inputs, action, taus)
    quantiles = jax.block_until_ready(quantiles)

    q_ref, _ = iqn_reference(params, inputs, action, taus)
    assert quantiles.shape == (batch_size, num_tau, 1)
    assert taus_out.shape == (batch_size, num_tau, 1)
    # bf16 MXU operands (f32 accumulation) -> relaxed tolerance vs f32 reference.
    assert np.allclose(np.asarray(quantiles), np.asarray(q_ref),
                       rtol=5e-2, atol=5e-2), \
        "Pallas kernel output mismatch vs reference (small batch)"

    # Second check exercising the multi-tile / megacore path (>= 2 grid steps).
    kb = jax.random.PRNGKey(1)
    kb_in, kb_act, kb_tau = jax.random.split(kb, 3)
    B2, T2 = 48, 32                      # R = 1536 -> 2 tiles of 768 rows
    inputs2 = jax.random.normal(kb_in, (B2, state_size), jnp.float32)
    action2 = jax.random.normal(kb_act, (B2, action_size), jnp.float32)
    taus2 = jax.random.uniform(kb_tau, (B2, T2), jnp.float32)
    q2, _ = iqn_forward(padded, inputs2, action2, taus2)
    q2 = jax.block_until_ready(q2)
    q2_ref, _ = iqn_reference(params, inputs2, action2, taus2)
    assert np.allclose(np.asarray(q2), np.asarray(q2_ref),
                       rtol=5e-2, atol=5e-2), \
        "Pallas kernel output mismatch vs reference (tiled batch)"

    print("KERNEL_OK")
</pallas_src>

<mosaic_0001>
module attributes {stable_mosaic.version = 11 : i64} {
  func.func @iqn_kernel(%arg0: i32, %arg1: memref<16x32xbf16, #tpu.memory_space<vmem>>, %arg2: memref<16x1xf32, #tpu.memory_space<vmem>>, %arg3: memref<1x64xf32, #tpu.memory_space<vmem>>, %arg4: memref<32x128xbf16, #tpu.memory_space<vmem>>, %arg5: memref<1x128xf32, #tpu.memory_space<vmem>>, %arg6: memref<64x128xbf16, #tpu.memory_space<vmem>>, %arg7: memref<1x128xf32, #tpu.memory_space<vmem>>, %arg8: memref<128x128xbf16, #tpu.memory_space<vmem>>, %arg9: memref<1x128xf32, #tpu.memory_space<vmem>>, %arg10: memref<1x128xbf16, #tpu.memory_space<vmem>>, %arg11: memref<1x1xf32, #tpu.memory_space<vmem>>, %arg12: memref<1x16xf32, #tpu.memory_space<vmem>>) attributes {dimension_semantics = [#tpu.dimension_semantics<parallel>], iteration_bounds = array<i64: 1>, scalar_prefetch = 0 : i64, scratch_operands = 0 : i64, tpu.core_type = #tpu.core_type<tc>, window_params = [{transform_indices = @transform_0, window_bounds = array<i64: 16, 32>}, {transform_indices = @transform_1, window_bounds = array<i64: 16, 1>}, {pipeline_mode = #tpu.pipeline_mode<synchronous>, transform_indices = @transform_2, window_bounds = array<i64: 1, 64>}, {pipeline_mode = #tpu.pipeline_mode<synchronous>, transform_indices = @transform_3, window_bounds = array<i64: 32, 128>}, {pipeline_mode = #tpu.pipeline_mode<synchronous>, transform_indices = @transform_4, window_bounds = array<i64: 1, 128>}, {pipeline_mode = #tpu.pipeline_mode<synchronous>, transform_indices = @transform_5, window_bounds = array<i64: 64, 128>}, {pipeline_mode = #tpu.pipeline_mode<synchronous>, transform_indices = @transform_6, window_bounds = array<i64: 1, 128>}, {pipeline_mode = #tpu.pipeline_mode<synchronous>, transform_indices = @transform_7, window_bounds = array<i64: 128, 128>}, {pipeline_mode = #tpu.pipeline_mode<synchronous>, transform_indices = @transform_8, window_bounds = array<i64: 1, 128>}, {pipeline_mode = #tpu.pipeline_mode<synchronous>, transform_indices = @transform_9, window_bounds = array<i64: 1, 128>}, {pipeline_mode = #tpu.pipeline_mode<synchronous>, transform_indices = @transform_10, window_bounds = array<i64: 1, 1>}, {transform_indices = @transform_11, window_bounds = array<i64: 1, 16>}]} {
    %c0 = arith.constant 0 : index
    %c0_0 = arith.constant 0 : index
    %0 = vector.load %arg1[%c0, %c0_0] : memref<16x32xbf16, #tpu.memory_space<vmem>>, vector<16x32xbf16>
    %c0_1 = arith.constant 0 : index
    %c0_2 = arith.constant 0 : index
    %1 = vector.load %arg4[%c0_1, %c0_2] : memref<32x128xbf16, #tpu.memory_space<vmem>>, vector<32x128xbf16>
    %cst = arith.constant dense<0.000000e+00> : vector<16x128xf32>
    %2 = tpu.matmul %0, %1, %cst {dimension_numbers = #tpu.dot_dimension_numbers<[1], [0], [0], [1], [0, 0, 1, 1], [], []>} : vector<16x32xbf16>, vector<32x128xbf16>, vector<16x128xf32> -> vector<16x128xf32>
    %c0_3 = arith.constant 0 : index
    %c0_4 = arith.constant 0 : index
    %3 = vector.load %arg5[%c0_3, %c0_4] : memref<1x128xf32, #tpu.memory_space<vmem>>, vector<1x128xf32>
    %4 = vector.broadcast %3 : vector<1x128xf32> to vector<16x128xf32>
    %5 = arith.addf %2, %4 : vector<16x128xf32>
    %cst_5 = arith.constant 0.000000e+00 : f32
    %6 = vector.broadcast %cst_5 : f32 to vector<16x128xf32>
    %7 = arith.maximumf %5, %6 : vector<16x128xf32>
    %c0_6 = arith.constant 0 : index
    %c0_7 = arith.constant 0 : index
    %8 = vector.load %arg2[%c0_6, %c0_7] : memref<16x1xf32, #tpu.memory_space<vmem>>, vector<16x1xf32>
    %c0_8 = arith.constant 0 : index
    %c0_9 = arith.constant 0 : index
    %9 = vector.load %arg3[%c0_8, %c0_9] : memref<1x64xf32, #tpu.memory_space<vmem>>, vector<1x64xf32>
    %10 = vector.broadcast %8 : vector<16x1xf32> to vector<16x64xf32>
    %11 = vector.broadcast %9 : vector<1x64xf32> to vector<16x64xf32>
    %12 = arith.mulf %10, %11 : vector<16x64xf32>
    %13 = math.cos %12 : vector<16x64xf32>
    %14 = arith.truncf %13 : vector<16x64xf32> to vector<16x64xbf16>
    %c0_10 = arith.constant 0 : index
    %c0_11 = arith.constant 0 : index
    %15 = vector.load %arg6[%c0_10, %c0_11] : memref<64x128xbf16, #tpu.memory_space<vmem>>, vector<64x128xbf16>
    %cst_12 = arith.constant dense<0.000000e+00> : vector<16x128xf32>
    %16 = tpu.matmul %14, %15, %cst_12 {dimension_numbers = #tpu.dot_dimension_numbers<[1], [0], [0], [1], [0, 0, 1, 1], [], []>} : vector<16x64xbf16>, vector<64x128xbf16>, vector<16x128xf32> -> vector<16x128xf32>
    %c0_13 = arith.constant 0 : index
    %c0_14 = arith.constant 0 : index
    %17 = vector.load %arg7[%c0_13, %c0_14] : memref<1x128xf32, #tpu.memory_space<vmem>>, vector<1x128xf32>
    %18 = vector.broadcast %17 : vector<1x128xf32> to vector<16x128xf32>
    %19 = arith.addf %16, %18 : vector<16x128xf32>
    %cst_15 = arith.constant 0.000000e+00 : f32
    %20 = vector.broadcast %cst_15 : f32 to vector<16x128xf32>
    %21 = arith.maximumf %19, %20 : vector<16x128xf32>
    %22 = arith.mulf %7, %21 : vector<16x128xf32>
    %23 = arith.truncf %22 : vector<16x128xf32> to vector<16x128xbf16>
    %c0_16 = arith.constant 0 : index
    %c0_17 = arith.constant 0 : index
    %24 = vector.load %arg8[%c0_16, %c0_17] : memref<128x128xbf16, #tpu.memory_space<vmem>>, vector<128x128xbf16>
    %cst_18 = arith.constant dense<0.000000e+00> : vector<16x128xf32>
    %25 = tpu.matmul %23, %24, %cst_18 {dimension_numbers = #tpu.dot_dimension_numbers<[1], [0], [0], [1], [0, 0, 1, 1], [], []>} : vector<16x128xbf16>, vector<128x128xbf16>, vector<16x128xf32> -> vector<16x128xf32>
    %c0_19 = arith.constant 0 : index
    %c0_20 = arith.constant 0 : index
    %26 = vector.load %arg9[%c0_19, %c0_20] : memref<1x128xf32, #tpu.memory_space<vmem>>, vector<1x128xf32>
    %27 = vector.broadcast %26 : vector<1x128xf32> to vector<16x128xf32>
    %28 = arith.addf %25, %27 : vector<16x128xf32>
    %cst_21 = arith.constant 0.000000e+00 : f32
    %29 = vector.broadcast %cst_21 : f32 to vector<16x128xf32>
    %30 = arith.maximumf %28, %29 : vector<16x128xf32>
    %c0_22 = arith.constant 0 : index
    %c0_23 = arith.constant 0 : index
    %31 = vector.load %arg10[%c0_22, %c0_23] : memref<1x128xbf16, #tpu.memory_space<vmem>>, vector<1x128xbf16>
    %32 = arith.truncf %30 : vector<16x128xf32> to vector<16x128xbf16>
    %cst_24 = arith.constant dense<0.000000e+00> : vector<1x16xf32>
    %33 = tpu.matmul %31, %32, %cst_24 {dimension_numbers = #tpu.dot_dimension_numbers<[1], [1], [0], [0], [0, 0, 1, 0], [], []>} : vector<1x128xbf16>, vector<16x128xbf16>, vector<1x16xf32> -> vector<1x16xf32>
    %c0_25 = arith.constant 0 : index
    %c0_26 = arith.constant 0 : index
    %34 = vector.load %arg11[%c0_25, %c0_26] : memref<1x1xf32, #tpu.memory_space<vmem>>, vector<1x1xf32>
    %35 = vector.broadcast %34 : vector<1x1xf32> to vector<1x16xf32>
    %36 = arith.addf %33, %35 : vector<1x16xf32>
    %c0_27 = arith.constant 0 : index
    %c0_28 = arith.constant 0 : index
    %37 = vector.load %arg12[%c0_27, %c0_28] : memref<1x16xf32, #tpu.memory_space<vmem>>, vector<1x16xf32>
    tpu.vector_store %arg12[%c0_27, %c0_28], %36 {strides = array<i32>} : memref<1x16xf32, #tpu.memory_space<vmem>>, vector<1x16xf32>,
    return
  }
  func.func @transform_0(%arg0: i32) -> (i32, i32) {
    %c0_i32 = arith.constant 0 : i32
    %c0_i32_0 = arith.constant 0 : i32
    return %arg0, %c0_i32 : i32, i32
  }
  func.func @transform_1(%arg0: i32) -> (i32, i32) {
    %c0_i32 = arith.constant 0 : i32
    %c0_i32_0 = arith.constant 0 : i32
    return %arg0, %c0_i32 : i32, i32
  }
  func.func @transform_2(%arg0: i32) -> (i32, i32) {
    %c0_i32 = arith.constant 0 : i32
    %c0_i32_0 = arith.constant 0 : i32
    %c0_i32_1 = arith.constant 0 : i32
    return %c0_i32, %c0_i32_0 : i32, i32
  }
  func.func @transform_3(%arg0: i32) -> (i32, i32) {
    %c0_i32 = arith.constant 0 : i32
    %c0_i32_0 = arith.constant 0 : i32
    %c0_i32_1 = arith.constant 0 : i32
    return %c0_i32, %c0_i32_0 : i32, i32
  }
  func.func @transform_4(%arg0: i32) -> (i32, i32) {
    %c0_i32 = arith.constant 0 : i32
    %c0_i32_0 = arith.constant 0 : i32
    %c0_i32_1 = arith.constant 0 : i32
    return %c0_i32, %c0_i32_0 : i32, i32
  }
  func.func @transform_5(%arg0: i32) -> (i32, i32) {
    %c0_i32 = arith.constant 0 : i32
    %c0_i32_0 = arith.constant 0 : i32
    %c0_i32_1 = arith.constant 0 : i32
    return %c0_i32, %c0_i32_0 : i32, i32
  }
  func.func @transform_6(%arg0: i32) -> (i32, i32) {
    %c0_i32 = arith.constant 0 : i32
    %c0_i32_0 = arith.constant 0 : i32
    %c0_i32_1 = arith.constant 0 : i32
    return %c0_i32, %c0_i32_0 : i32, i32
  }
  func.func @transform_7(%arg0: i32) -> (i32, i32) {
    %c0_i32 = arith.constant 0 : i32
    %c0_i32_0 = arith.constant 0 : i32
    %c0_i32_1 = arith.constant 0 : i32
    return %c0_i32, %c0_i32_0 : i32, i32
  }
  func.func @transform_8(%arg0: i32) -> (i32, i32) {
    %c0_i32 = arith.constant 0 : i32
    %c0_i32_0 = arith.constant 0 : i32
    %c0_i32_1 = arith.constant 0 : i32
    return %c0_i32, %c0_i32_0 : i32, i32
  }
  func.func @transform_9(%arg0: i32) -> (i32, i32) {
    %c0_i32 = arith.constant 0 : i32
    %c0_i32_0 = arith.constant 0 : i32
    %c0_i32_1 = arith.constant 0 : i32
    return %c0_i32, %c0_i32_0 : i32, i32
  }
  func.func @transform_10(%arg0: i32) -> (i32, i32) {
    %c0_i32 = arith.constant 0 : i32
    %c0_i32_0 = arith.constant 0 : i32
    %c0_i32_1 = arith.constant 0 : i32
    return %c0_i32, %c0_i32_0 : i32, i32
  }
  func.func @transform_11(%arg0: i32) -> (i32, i32) {
    %c0_i32 = arith.constant 0 : i32
    %c0_i32_0 = arith.constant 0 : i32
    return %c0_i32, %arg0 : i32, i32
  }
}

</mosaic_0001>

<bundles_post_ra>
// kernel: tpu_custom_call.1
= control target key start
LH: loop header
LB: loop body
LE: loop exit
PB: predicated region body
PF: predicated region fallthrough
CT: control target
= control target key end

     0   :  { %s1115_s0 = inlined_call_operand.vmem [shape: bf16[16,32], index: 0, kind: input, shape index: {}]   ;;  %s1116_s1 = inlined_call_operand.vmem [shape: f32[16,1], index: 1, kind: input, shape index: {}]   ;;  %s1117_s2 = inlined_call_operand.hbm [shape: f32[1,64], index: 2, kind: input, shape index: {}]   ;;  %s1118_s3 = inlined_call_operand.vmem [shape: bf16[32,128], index: 3, kind: input, shape index: {}]   ;;  %s1119_s4 = inlined_call_operand.vmem [shape: f32[1,128], index: 4, kind: input, shape index: {}]   ;;  %s1120_s5 = inlined_call_operand.hbm [shape: bf16[64,128], index: 5, kind: input, shape index: {}]   ;;  %s1121_s6 = inlined_call_operand.vmem [shape: f32[1,128], index: 6, kind: input, shape index: {}]   ;;  %s1122_s7 = inlined_call_operand.hbm [shape: bf16[128,128], index: 7, kind: input, shape index: {}]   ;;  %s1123_s8 = inlined_call_operand.vmem [shape: f32[1,128], index: 8, kind: input, shape index: {}]   ;;  %s1124_s9 = inlined_call_operand.vmem [shape: bf16[1,128], index: 9, kind: input, shape index: {}]   ;;  %s1125_s10 = inlined_call_operand.<no memory space> [shape: f32[1,1], index: 10, kind: input, shape index: {}]   ;;  %s1126_s11 = inlined_call_operand.hbm [shape: f32[1,16], index: 11, kind: output, shape index: {}]  }
   0x1   :  { %v16_v0 = vstv %s1125_s10 }
   0x2   :  { %17 = vst [vmem:[#allocation2] sm:$0x1] %v16_v0 }
   0x3   :  { %18 = vsyncpa [#allocation4], 0 }
   0x4   :  { %19 = vsyncpa [#allocation7], 0 }
   0x5   :  { %20 = vsyncpa [#allocation5], 0  ;;  %s887_s19 = smov [#allocation6]  }
   0x6   :  { %s44_s20 = sshll.u32 %s887_s19, 4  ;;  %s45_s20 = int_to_ptr.vmem [resolvable:$true] %s44_s20 }
   0x7   :  { %s809_s21 = scalar_lea.vmem %s45_s20, 512  ;;  %p814_p1 = scmp.lt.s32.totalorder %s45_s20, %s45_s20 }
   0x8   :  { %p810_p0 = scmp.ne.s32.totalorder %s45_s20, %s809_s21  ;;  %p815_p2 = scmp.lt.s32.totalorder %s809_s21, %s809_s21 }
   0xa   :  { %p816_p3 = por %p815_p2, %p814_p1 }
   0xc   :  { %p817_p4 = pnand %p816_p3, %p810_p0 }
   0xe   :  { %820 = shalt.err (!%p817_p4)
}
   0xf   :  { %s888_s22 = smov 64   ;;  %s889_s23 = smov 4  }
  0x10   :  { %50 = dma.hbm_to_vmem [thread:$0]  %s1120_s5, 512, %s45_s20, [#allocation7], %s888_s22, %s888_s22, %s889_s23  }
  0x11   :  { %s890_s10 = smov [#allocation3]   ;;  %s891_s27 = smov [#allocation8]  }
  0x12   :  { %s31_s26 = sshll.u32 %s890_s10, 4  ;;  %s58_s28 = sshll.u32 %s891_s27, 4  ;;  %s32_s26 = int_to_ptr.vmem [resolvable:$true] %s31_s26  ;;  %s59_s28 = int_to_ptr.vmem [resolvable:$true] %s58_s28 }
  0x13   :  { %s829_s29 = scalar_lea.vmem %s32_s26, 16  ;;  %s833_s30 = scalar_lea.vmem %s32_s26, 32 }
  0x14   :  { %p830_p5 = scmp.ne.s32.totalorder %s32_s26, %s829_s29  ;;  %p834_p6 = scmp.lt.s32.totalorder %s32_s26, %s32_s26 }
  0x15   :  { %p835_p7 = scmp.lt.s32.totalorder %s833_s30, %s829_s29 }
  0x17   :  { %p836_p8 = por %p835_p7, %p834_p6 }
  0x19   :  { %p837_p9 = pnand %p836_p8, %p830_p5 }
  0x1b   :  { %840 = shalt.err (!%p837_p9)
}
  0x1c   :  { %34 = dma.hbm_to_vmem [thread:$0]  %s1117_s2, 16, %s32_s26, [#allocation4]  }
  0x1d   :  { %s849_s14 = scalar_lea.vmem %s59_s28, 1024  ;;  %p854_p11 = scmp.lt.s32.totalorder %s59_s28, %s59_s28 }
  0x1e   :  { %p850_p10 = scmp.ne.s32.totalorder %s59_s28, %s849_s14  ;;  %p855_p12 = scmp.lt.s32.totalorder %s849_s14, %s849_s14 }
  0x20   :  { %p856_p13 = por %p855_p12, %p854_p11 }
  0x22   :  { %p857_p0 = pnand %p856_p13, %p850_p10 }
  0x24   :  { %860 = shalt.err (!%p857_p0)
}
  0x25   :  { %64 = dma.hbm_to_vmem [thread:$0]  %s1122_s7, 1024, %s59_s28, [#allocation7], %s888_s22, %s888_s22, %s889_s23  }
  0x26   :  { %881 = dma.done.wait [#allocation4], 16  }
  0x27   :  { %882 = vsyncadd [#allocation4], 4294967280 }
  0x28   :  { %883 = dma.done.wait [#allocation7], 1536  }
  0x29   :  { %884 = vsyncadd [#allocation7], 4294965760  ;;  %v892_v1 = vmov 0   ;;  %v158_v2 = vld [vmem:[%s1116_s1] sm:$0xff]  ;;  %v159_v3 = vld [vmem:[%s1116_s1 + $0x8] sm:$0xff]  ;;  %v893_v5 = vmov 0.0  }
  0x2a   :  { %776 = vset.pattern.permute.xlu0 %v892_v1  ;;  %777 = vset.pattern.permute.xlu1 %v892_v1  ;;  %v778_v4 = vld [vmem:[%s1118_s3 + $0x8] sm:$0xff]   ;;  %v779_v6 = vld [vmem:[%s1118_s3] sm:$0xff]   ;;  %vm111_vm0 = vcmask 261120   ;;  %vm894_vm1 = vmmov 0   ;;  %v782_v9 = vld [vmem:[#allocation6 + $0x10] sm:$0xff]  }
  0x2b   :  { %163 = vperm.xlu0 %776, %v158_v2   ;;  %707 = vmatprep.subr.bf16.mxu1 %v893_v5  ;;  %v780_v7 = vld [vmem:[%s1115_s0] sm:$0xff]   ;;  %v783_v10 = vld [vmem:[#allocation6 + $0x8] sm:$0xff]   ;;  %v895_v33 = vmov 683565275   ;;  %v896_v37 = vmov 2475754826  }
  0x2c   :  { %727 = vmatprep.subr.bf16.mxu0 %v893_v5  ;;  %708 = vmatpush3.bf16.msra.mxu1 %v778_v4  ;;  %v781_v8 = vld [vmem:[#allocation6 + $0x18] sm:$0xff]   ;;  %v784_v11 = vld [vmem:[#allocation6] sm:$0xff]   ;;  %v897_v39 = vmov 2131351028   ;;  %v898_v41 = vmov 2102212464  }
  0x2d   :  { %709 = vmatprep.subr.bf16.mxu1 %v893_v5  ;;  %711 = vmatprep.mubr.msk.bf16.mxu1 %vm894_vm1, %v893_v5  ;;  %v664_v12 = vld [vmem:[#allocation3] ss:$0 sm:$0xff]  ;;  %v899_v43 = vmov 920167782   ;;  %v900_v50 = vmov 1326507024  }
  0x2e   :  { %743 = vmatprep.mubr.msk.bf16.mxu0 %vm894_vm1, %v893_v5  ;;  %v785_v2 = vld [vmem:[#allocation8 + $0x38] sm:$0xff]  }
  0x2f   :  { %168 = vperm.xlu0 %776, %v159_v3   ;;  %728 = vmatpush3.bf16.msra.mxu0 %v785_v2 }
  0x30   :  { %710 = vmatpush3.bf16.msra.mxu1 %v779_v6  ;;  %729 = vmatprep.subr.bf16.mxu0 %v893_v5 }
  0x31   :  { %715 = vmatprep.subr.bf16.mxu1 %v893_v5 }
  0x33   :  { %712 = vmatmul.mubr.msk.bf16.vlgmr.msra.gmra.mxu1 %vm111_vm0, %v780_v7 }
  0x34   :  { %716 = vmatpush3.bf16.msra.mxu1 %v781_v8  ;;  %723 = vmatprep.mubr.msk.bf16.mxu1 %vm894_vm1, %v893_v5 }
  0x35   :  { %717 = vmatprep.subr.bf16.mxu1 %v893_v5 }
  0x38   :  { %718 = vmatpush3.bf16.msra.mxu1 %v782_v9 }
  0x39   :  { %719 = vmatprep.subr.bf16.mxu1 %v893_v5 }
  0x3c   :  { %720 = vmatpush3.bf16.msra.mxu1 %v783_v10 }
  0x3d   :  { %721 = vmatprep.subr.bf16.mxu1 %v893_v5 }
  0x40   :  { %722 = vmatpush3.bf16.msra.mxu1 %v784_v11 }
  0x41   :  { %747 = vmatprep.subr.bf16.mxu1 %v893_v5 }
  0xa6   :  { %v164_v13 = vpop.permute.xlu0 %163 }
  0xa7   :  { %v1003_v14 = vmul.f32 %v664_v12, %v164_v13 }
  0xa9   :  { %v179_v15 = vand.u32 2147483647, %v1003_v14  ;;  %v182_v16 = vand.u32 2139095040, %v1003_v14  ;;  %vm181_vm0 = vcmp.lt.s32.totalorder %v1003_v14, 0 }
  0xaa   :  { %v169_v17 = vpop.permute.xlu0 %168 }
  0xab   :  { %v183_v18 = vshrl.u32 %v182_v16, 23  ;;  %v1007_v19 = vmul.f32 %v664_v12, %v169_v17  ;;  %v186_v20 = vand.u32 8388607, %v179_v15 }
  0xad   :  { %v665_v21 = vadd.s32 4294967169, %v183_v18  ;;  %v285_v22 = vand.u32 2139095040, %v1007_v19  ;;  %v187_v24 = vor.u32 8388608, %v186_v20  ;;  %v282_v26 = vand.u32 2147483647, %v1007_v19  ;;  %v786_v20 = vld [vmem:[#allocation8 + $0x30] sm:$0xff]  }
  0xae   :  { %730 = vmatpush3.bf16.msra.mxu0 %v786_v20 }
  0xaf   :  { %v189_v23 = vadd.s32 1, %v665_v21  ;;  %v286_v25 = vshrl.u32 %v285_v22, 23  ;;  %v1013_v31 = vshll.u32 %v187_v24, 8  ;;  %v289_v35 = vand.u32 8388607, %v282_v26  ;;  %731 = vmatprep.subr.bf16.mxu0 %v893_v5 }
  0xb1   :  { %vm190_vm2 = vcmp.gt.s32.totalorder %v189_v23, 0  ;;  %v669_v28 = vadd.s32 4294967169, %v286_v25  ;;  %v290_v1 = vor.u32 8388608, %v289_v35 }
  0xb2   :  { %v191_v27 = vsel %vm190_vm2, %v189_v23, 0  ;;  %vm1077_vm2 = vcmp.le.f32.partialorder %v179_v15, 0.7853982 }
  0xb3   :  { %v192_v29 = vshrl.u32 %v191_v27, 5  ;;  %v193_v30 = vand.u32 31, %v191_v27  ;;  %v292_v36 = vadd.s32 1, %v669_v28  ;;  %v1035_v18 = vshll.u32 %v290_v1, 8 }
  0xb5   :  { %v194_v32 = vsub.s32 32, %v193_v30  ;;  %v196_v34 = vshll.u32 %v895_v33, %v193_v30  ;;  %v199_v38 = vshll.u32 %v896_v37, %v193_v30  ;;  %v202_v40 = vshll.u32 %v897_v39, %v193_v30 }
  0xb6   :  { %v205_v42 = vshll.u32 %v898_v41, %v193_v30  ;;  %v208_v44 = vshll.u32 %v899_v43, %v193_v30  ;;  %vm211_vm3 = vcmp.lt.s32.totalorder %v192_v29, 1  ;;  %vm213_vm4 = vcmp.lt.s32.totalorder %v192_v29, 3  ;;  %v787_v30 = vld [vmem:[#allocation8 + $0x28] sm:$0xff]  }
  0xb7   :  { %v197_v45 = vshrl.u32 %v896_v37, %v194_v32  ;;  %v200_v46 = vshrl.u32 %v897_v39, %v194_v32  ;;  %v203_v47 = vshrl.u32 %v898_v41, %v194_v32  ;;  %v195_v48 = vshrl.u32 %v895_v33, %v194_v32  ;;  %732 = vmatpush3.bf16.msra.mxu0 %v787_v30 }
  0xb8   :  { %v206_v49 = vshrl.u32 %v899_v43, %v194_v32  ;;  %v209_v51 = vshrl.u32 %v900_v50, %v194_v32  ;;  %vm293_vm5 = vcmp.gt.s32.totalorder %v292_v36, 0  ;;  %vm214_vm6 = vcmp.lt.s32.totalorder %v192_v29, 4  ;;  %733 = vmatprep.subr.bf16.mxu0 %v893_v5 }
  0xb9   :  { %v198_v52 = vor.u32 %v197_v45, %v196_v34  ;;  %v201_v53 = vor.u32 %v200_v46, %v199_v38  ;;  %v204_v54 = vor.u32 %v203_v47, %v202_v40  ;;  %v294_v57 = vsel %vm293_vm5, %v292_v36, 0  ;;  %v788_v45 = vld [vmem:[#allocation8 + $0x20] sm:$0xff]  }
  0xba   :  { %v207_v55 = vor.u32 %v206_v49, %v205_v42  ;;  %v210_v56 = vor.u32 %v209_v51, %v208_v44  ;;  %vm212_vm7 = vcmp.lt.s32.totalorder %v192_v29, 2  ;;  %v296_v6 = vand.u32 31, %v294_v57 }
  0xbb   :  { %v215_v58 = vsel %vm211_vm3, %v195_v48, %v198_v52  ;;  %v216_v59 = vsel %vm214_vm6, %v204_v54, 2102212464  ;;  %v219_v60 = vsel %vm211_vm3, %v198_v52, %v201_v53  ;;  %v223_v61 = vsel %vm211_vm3, %v201_v53, %v204_v54  ;;  %734 = vmatpush3.bf16.msra.mxu0 %v788_v45 }
  0xbc   :  { %v217_v62 = vsel %vm213_vm4, %v201_v53, %v216_v59  ;;  %v220_v63 = vsel %vm214_vm6, %v207_v55, 920167782  ;;  %v224_v0 = vsel %vm214_vm6, %v210_v56, 1326507024  ;;  %v295_v16 = vshrl.u32 %v294_v57, 5  ;;  %v789_v59 = vld [vmem:[#allocation8 + $0x18] sm:$0xff]   ;;  %735 = vmatprep.subr.bf16.mxu0 %v893_v5 }
  0xbd   :  { %v221_v3 = vsel %vm213_vm4, %v204_v54, %v220_v63  ;;  %v225_v4 = vsel %vm213_vm4, %v207_v55, %v224_v0  ;;  %v218_v7 = vsel %vm212_vm7, %v215_v58, %v217_v62  ;;  %v297_v17 = vsub.s32 32, %v296_v6 }
  0xbe   :  { %v222_v8 = vsel %vm212_vm7, %v219_v60, %v221_v3  ;;  %v226_v9 = vsel %vm212_vm7, %v223_v61, %v225_v4  ;;  %v234_v21 = vmul.u32 %v1013_v31, %v218_v7  ;;  %v299_v22 = vshll.u32 %v895_v33, %v296_v6 }
  0xbf   :  { %v1026_v10 = vmul.u32.u64.low %v1013_v31, %v226_v9  ;;  %v1027_v11 = vmul.u32.u64.high %v1013_v31, %v226_v9, %v1026_v10  ;;  %v1030_v12 = vmul.u32.u64.low %v1013_v31, %v222_v8  ;;  %v1031_v13 = vmul.u32.u64.high %v1013_v31, %v222_v8, %v1030_v12  ;;  %736 = vmatpush3.bf16.msra.mxu0 %v789_v59 }
  0xc0   :  { %v302_v23 = vshll.u32 %v896_v37, %v296_v6  ;;  %v305_v24 = vshll.u32 %v897_v39, %v296_v6  ;;  %v300_v25 = vshrl.u32 %v896_v37, %v297_v17  ;;  %v303_v27 = vshrl.u32 %v897_v39, %v297_v17  ;;  %737 = vmatprep.subr.bf16.mxu0 %v893_v5 }
  0xc1   :  { %v306_v28 = vshrl.u32 %v898_v41, %v297_v17  ;;  %v308_v29 = vshll.u32 %v898_v41, %v296_v6  ;;  %vm236_vm8 = vc.u32 %v1027_v11, %v1030_v12  ;;  %v237_v32 = vadd.s32 1, %v1031_v13 }
  0xc2   :  { %v309_v34 = vshrl.u32 %v899_v43, %v297_v17  ;;  %v311_v35 = vshll.u32 %v899_v43, %v296_v6  ;;  %v301_v31 = vor.u32 %v300_v25, %v299_v22  ;;  %v304_v36 = vor.u32 %v303_v27, %v302_v23 }
  0xc3   :  { %v307_v38 = vor.u32 %v306_v28, %v305_v24  ;;  %v312_v40 = vshrl.u32 %v900_v50, %v297_v17  ;;  %v238_v37 = vsel %vm236_vm8, %v237_v32, %v1031_v13  ;;  %vm314_vm9 = vcmp.lt.s32.totalorder %v295_v16, 1 }
  0xc4   :  { %v310_v39 = vor.u32 %v309_v34, %v308_v29  ;;  %vm317_vm10 = vcmp.lt.s32.totalorder %v295_v16, 4  ;;  %v239_v41 = vadd.s32 %v238_v37, %v234_v21  ;;  %vm316_vm11 = vcmp.lt.s32.totalorder %v295_v16, 3 }
  0xc5   :  { %v313_v42 = vor.u32 %v312_v40, %v311_v35  ;;  %v319_v44 = vsel %vm317_vm10, %v307_v38, 2102212464  ;;  %v298_v46 = vshrl.u32 %v895_v33, %v297_v17  ;;  %v322_v43 = vsel %vm314_vm9, %v301_v31, %v304_v36 }
  0xc6   :  { %v323_v47 = vsel %vm317_vm10, %v310_v39, 920167782  ;;  %v326_v48 = vsel %vm314_vm9, %v304_v36, %v307_v38  ;;  %v240_v49 = vadd.s32 536870912, %v239_v41  ;;  %vm315_vm12 = vcmp.lt.s32.totalorder %v295_v16, 2 }
  0xc7   :  { %v324_v50 = vsel %vm316_vm11, %v307_v38, %v323_v47  ;;  %v327_v51 = vsel %vm317_vm10, %v313_v42, 1326507024  ;;  %v318_v52 = vsel %vm314_vm9, %v298_v46, %v301_v31  ;;  %v320_v53 = vsel %vm316_vm11, %v304_v36, %v319_v44 }
  0xc8   :  { %v325_v54 = vsel %vm315_vm12, %v322_v43, %v324_v50  ;;  %v328_v55 = vsel %vm316_vm11, %v310_v39, %v327_v51  ;;  %v1052_v33 = vshrl.u32 %v240_v49, 30  ;;  %v321_v63 = vsel %vm315_vm12, %v318_v52, %v320_v53 }
  0xc9   :  { %v329_v56 = vsel %vm315_vm12, %v326_v48, %v328_v55  ;;  %v1055_v57 = vmul.u32.u64.low %v1035_v18, %v325_v54  ;;  %v1056_v58 = vmul.u32.u64.high %v1035_v18, %v325_v54, %v1055_v57  ;;  %v337_v2 = vmul.u32 %v1035_v18, %v321_v63 }
  0xca   :  { %v1059_v60 = vmul.u32.u64.low %v1035_v18, %v329_v56  ;;  %v1060_v61 = vmul.u32.u64.high %v1035_v18, %v329_v56, %v1059_v60  ;;  %v242_v62 = vshll.u32 %v1052_v33, 30  ;;  %v235_v18 = vadd.s32 %v1030_v12, %v1027_v11 }
  0xcb   :  { %v340_v1 = vadd.s32 1, %v1056_v58  ;;  %vm284_vm3 = vcmp.lt.s32.totalorder %v1007_v19, 0  ;;  %v265_v15 = vsub.s32 4, %v1052_v33  ;;  %vm283_vm4 = vcmp.le.f32.partialorder %v282_v26, 0.7853982 }
  0xcc   :  { %v243_v0 = vsub.s32 %v239_v41, %v242_v62  ;;  %vm339_vm13 = vc.u32 %v1060_v61, %v1055_v57  ;;  %v338_v37 = vadd.s32 %v1055_v57, %v1060_v61  ;;  %vm271_vm11 = vweird.f32 %v1003_v14 }
  0xcd   :  { %v341_v4 = vsel %vm339_vm13, %v340_v1, %v1056_v58  ;;  %v266_v57 = vsel %vm181_vm0, %v265_v15, %v1052_v33  ;;  %vm374_vm12 = vweird.f32 %v1007_v19  ;;  %vm425_vm13 = vcmask 523264  }
  0xce   :  { %v245_v3 = vsub.s32 0, %v243_v0  ;;  %v342_v6 = vadd.s32 %v341_v4, %v337_v2  ;;  %v268_v59 = vsel %vm1077_vm2, 0, %v266_v57 }
  0xcf   :  { %v272_v62 = vand.u32 3, %v268_v59 }
  0xd0   :  { %v666_v7 = vmin.u32 %v245_v3, %v243_v0  ;;  %v343_v8 = vadd.s32 536870912, %v342_v6 }
  0xd1   :  { %vm274_vm5 = vcmp.eq.s32.totalorder %v272_v62, 0  ;;  %vm277_vm6 = vcmp.eq.s32.totalorder %v272_v62, 2  ;;  %vm273_vm7 = vcmp.lt.s32.totalorder %v272_v62, 2 }
  0xd2   :  { %v247_v9 = vclz %v666_v7  ;;  %v344_v10 = vshrl.u32 %v343_v8, 30 }
  0xd4   :  { %v667_v13 = vadd.s32 4294967294, %v247_v9  ;;  %v345_v16 = vshll.u32 %v344_v10, 30  ;;  %v368_v56 = vsub.s32 4, %v344_v10 }
  0xd6   :  { %vm668_vm14 = vcmp.lt.s32.totalorder %v667_v13, 0  ;;  %v346_v20 = vsub.s32 %v342_v6, %v345_v16  ;;  %v369_v60 = vsel %vm284_vm3, %v368_v56, %v344_v10 }
  0xd7   :  { %v250_v17 = vsel %vm668_vm14, 0, %v667_v13  ;;  %v371_v63 = vsel %vm283_vm4, 0, %v369_v60 }
  0xd8   :  { %v251_v21 = vsub.s32 32, %v250_v17  ;;  %v255_v22 = vsub.s32 4294967266, %v250_v17  ;;  %v348_v23 = vsub.s32 0, %v346_v20  ;;  %v252_v24 = vshll.u32 %v243_v0, %v250_v17 }
  0xd9   :  { %v375_v1 = vand.u32 3, %v371_v63 }
  0xda   :  { %v253_v25 = vshrl.u32 %v235_v18, %v251_v21  ;;  %v256_v27 = vadd.s32 127, %v255_v22  ;;  %v670_v28 = vmin.u32 %v348_v23, %v346_v20 }
  0xdb   :  { %vm380_vm8 = vcmp.eq.s32.totalorder %v375_v1, 2  ;;  %vm377_vm9 = vcmp.eq.s32.totalorder %v375_v1, 0  ;;  %vm376_vm10 = vcmp.lt.s32.totalorder %v375_v1, 2 }
  0xdc   :  { %v254_v29 = vor.u32 %v253_v25, %v252_v24  ;;  %v257_v30 = vshll.u32 %v256_v27, 23  ;;  %v350_v32 = vclz %v670_v28  ;;  %v790_v24 = vld [vmem:[#allocation8 + $0x10] sm:$0xff]   ;;  %v673_v25 = vld [vmem:[%s1121_s6] ss:$0 sm:$0xff] }
  0xdd   :  { %738 = vmatpush3.bf16.msra.mxu0 %v790_v24  ;;  %v659_v27 = vld [vmem:[%s1119_s4] ss:$0 sm:$0xff] }
  0xde   :  { %v258_v34 = vor.u32 4788187, %v257_v30  ;;  %v671_v35 = vadd.s32 4294967294, %v350_v32  ;;  %v261_v36 = vcvt.s32.f32 %v254_v29  ;;  %739 = vmatprep.subr.bf16.mxu0 %v893_v5 }
  0xe0   :  { %v259_v31 = vand.u32 2147483647, %v258_v34  ;;  %vm672_vm15 = vcmp.lt.s32.totalorder %v671_v35, 0 }
  0xe1   :  { %v353_v40 = vsel %vm672_vm15, 0, %v671_v35 }
  0xe2   :  { %v262_v38 = vmul.f32 %v261_v36, %v259_v31  ;;  %v354_v11 = vsub.s32 32, %v353_v40  ;;  %v358_v12 = vsub.s32 4294967266, %v353_v40  ;;  %v355_v41 = vshll.u32 %v346_v20, %v353_v40 }
  0xe4   :  { %v263_v39 = vxor.u32 2147483648, %v262_v38  ;;  %v356_v42 = vshrl.u32 %v338_v37, %v354_v11  ;;  %v359_v44 = vadd.s32 127, %v358_v12 }
  0xe6   :  { %v264_v45 = vsel %vm181_vm0, %v263_v39, %v262_v38  ;;  %v357_v43 = vor.u32 %v356_v42, %v355_v41  ;;  %v360_v47 = vshll.u32 %v359_v44, 23  ;;  %v591_v41 = vld [vmem:[#allocation2] sm:$0x1] }
  0xe7   :  { %v267_v48 = vsel %vm1077_vm2, %v1003_v14, %v264_v45  ;;  %v791_v14 = vld [vmem:[#allocation8 + $0x8] sm:$0xff]   ;;  %594 = vperm.xlu1 %777, %v591_v41   ;;  %v679_v42 = vld [vmem:[%s1123_s8] ss:$0 sm:$0xff]  ;;  %s901_s8 = smov [#allocation9]  }
  0xe8   :  { %v361_v49 = vor.u32 4788187, %v360_v47  ;;  %793 = vcosq.f32 %v267_v48  ;;  %v364_v51 = vcvt.s32.f32 %v357_v43  ;;  %740 = vmatpush3.bf16.msra.mxu0 %v791_v14  ;;  %s649_s26 = sshll.u32 %s901_s8, 4  ;;  %s650_s26 = int_to_ptr.vmem [resolvable:$true] %s649_s26 }
  0xe9   :  { %795 = vsinq.f32 %v267_v48  ;;  %741 = vmatprep.subr.bf16.mxu0 %v893_v5  ;;  %s861_s27 = scalar_lea.vmem %s650_s26, 16  ;;  %s865_s28 = scalar_lea.vmem %s650_s26, 32 }
  0xea   :  { %v362_v50 = vand.u32 2147483647, %v361_v49  ;;  %p862_p1 = scmp.ne.s32.totalorder %s650_s26, %s861_s27  ;;  %p866_p2 = scmp.lt.s32.totalorder %s650_s26, %s650_s26 }
  0xeb   :  { %p867_p3 = scmp.lt.s32.totalorder %s865_s28, %s861_s27 }
  0xec   :  { %v365_v52 = vmul.f32 %v364_v51, %v362_v50 }
  0xed   :  { %p868_p4 = por %p867_p3, %p866_p2 }
  0xee   :  { %v366_v53 = vxor.u32 2147483648, %v365_v52 }
  0xef   :  { %p869_p5 = pnand %p868_p4, %p862_p1 }
  0xf0   :  { %v367_v54 = vsel %vm284_vm3, %v366_v53, %v365_v52  ;;  %v589_v52 = vld [vmem:[%s1124_s9] sm:$0x1]  ;;  %v597_v53 = vlaneseq }
  0xf1   :  { %v370_v55 = vsel %vm283_vm4, %v1007_v19, %v367_v54  ;;  %v792_v19 = vld [vmem:[#allocation8] sm:$0xff]  }
  0xf2   :  { %797 = vcosq.f32 %v370_v55  ;;  %742 = vmatpush3.bf16.msra.mxu0 %v792_v19  ;;  %v598_v15 = vshrl.u32 %v597_v53, 7 }
  0xf3   :  { %799 = vsinq.f32 %v370_v55  ;;  %v149_v18 = vpop.f32.mrf.mxu1 }
  0xf4   :  { %v150_v32 = vadd.f32 %v659_v27, %v149_v18  ;;  %v599_v54 = vsub.s32 0, %v598_v15 }
  0xf5   :  { %v794_v58 = vpop.eup %793  ;;  %v713_v21 = vpop.f32.mrf.mxu1 }
  0xf6   :  { %v796_v61 = vpop.eup %795  ;;  %v278_v26 = vxor.u32 2147483648, %v794_v58  ;;  %v156_v40 = vmax.f32 %v150_v32, 0.0 }
  0xf7   :  { %v275_v0 = vxor.u32 2147483648, %v796_v61  ;;  %v152_v22 = vpop.f32.mrf.mxu1 }
  0xf8   :  { %v279_v4 = vsel %vm277_vm6, %v278_v26, %v796_v61  ;;  %v153_v34 = vadd.f32 %v659_v27, %v152_v22 }
  0xf9   :  { %v276_v3 = vsel %vm274_vm5, %v794_v58, %v275_v0  ;;  %v714_v23 = vpop.f32.mrf.mxu1 }
  0xfa   :  { %v280_v8 = vsel %vm273_vm7, %v276_v3, %v279_v4 }
  0xfb   :  { %v281_v16 = vsel %vm271_vm11, nan, %v280_v8 }
  0xff   :  { %v798_v2 = vpop.eup %797 }
 0x100   :  { %v800_v6 = vpop.eup %799  ;;  %v381_v7 = vxor.u32 2147483648, %v798_v2 }
 0x101   :  { %v378_v33 = vxor.u32 2147483648, %v800_v6 }
 0x102   :  { %v382_v9 = vsel %vm380_vm8, %v381_v7, %v800_v6 }
 0x103   :  { %v379_v10 = vsel %vm377_vm9, %v798_v2, %v378_v33 }
 0x104   :  { %v383_v13 = vsel %vm376_vm10, %v379_v10, %v382_v9 }
 0x105   :  { %v384_v17 = vsel %vm374_vm12, nan, %v383_v13 }
 0x106   :  { %v385_v20 = vpack.c.bf16 %v384_v17, %v281_v16 }
 0x108   :  { %724 = vmatmul.mubr.msk.bf16.vlgmr.msra.gmra.mxu1 %vm425_vm13, %v385_v20 }
 0x109   :  { %749 = vmatprep.mubr.msk.bf16.mxu1 %vm894_vm1, %v893_v5  ;;  %v157_v5 = vmax.f32 %v153_v34, 0.0  ;;  %vm641_vm1 = vcmask 122880  }
 0x162   :  { %v595_v55 = vpop.permute.xlu1 %594 }
 0x163   :  { %v600_v56 = vrot.slane %v595_v55, %v599_v54 }
 0x1c8   :  { %v463_v28 = vpop.f32.mrf.mxu1 }
 0x1c9   :  { %v464_v29 = vadd.f32 %v673_v25, %v463_v28 }
 0x1ca   :  { %v725_v30 = vpop.f32.mrf.mxu1 }
 0x1cb   :  { %v470_v31 = vmax.f32 %v464_v29, 0.0 }
 0x1cc   :  { %v466_v35 = vpop.f32.mrf.mxu1 }
 0x1cd   :  { %v467_v36 = vadd.f32 %v673_v25, %v466_v35  ;;  %v472_v11 = vmul.f32 %v470_v31, %v156_v40 }
 0x1ce   :  { %v726_v38 = vpop.f32.mrf.mxu1 }
 0x1cf   :  { %v471_v37 = vmax.f32 %v467_v36, 0.0 }
 0x1d1   :  { %v473_v12 = vmul.f32 %v471_v37, %v157_v5 }
 0x1d3   :  { %v474_v39 = vpack.c.bf16 %v473_v12, %v472_v11 }
 0x1d5   :  { %744 = vmatmul.mubr.bf16.vlgmr.msra.gmra.mxu0 %v474_v39 }
 0x295   :  { %v580_v44 = vpop.f32.mrf.mxu0 }
 0x296   :  { %v581_v46 = vadd.f32 %v679_v42, %v580_v44 }
 0x297   :  { %v745_v45 = vpop.f32.mrf.mxu0 }
 0x298   :  { %v587_v49 = vmax.f32 %v581_v46, 0.0 }
 0x299   :  { %v583_v43 = vpop.f32.mrf.mxu0 }
 0x29a   :  { %v584_v47 = vadd.f32 %v679_v42, %v583_v43 }
 0x29b   :  { %v746_v48 = vpop.f32.mrf.mxu0 }
 0x29c   :  { %v588_v50 = vmax.f32 %v584_v47, 0.0 }
 0x29e   :  { %v590_v51 = vpack.c.bf16 %v588_v50, %v587_v49 }
 0x2a0   :  { %748 = vmatpush3.bf16.xpose.msra.mxu1 %v590_v51 }
 0x2a7   :  { %750 = vmatmul.mubr.bf16.vlgmr.msra.gmra.mxu1 %v589_v52 }
 0x367   :  { %v635_v57 = vpop.f32.mrf.mxu1 }
 0x368   :  { %v636_v58 = vadd.f32 %v635_v57, %v600_v56 }
 0x369   :  { %v751_v59 = vpop.f32.mrf.mxu1 }
 0x36a   :  { %642 = vst.msk [vmem:[#allocation9] sm:$0x1] %vm641_vm1, %v636_v58 }
 0x36b   :  { %v638_v60 = vpop.f32.mrf.mxu1 }
 0x36c   :  { %872 = shalt.err (!%p869_p5)
}
 0x36d   :  { %652 = dma.vmem_to_hbm [thread:$0]  %s650_s26, 16, %s1126_s11, [#allocation5]   ;;  %v752_v61 = vpop.f32.mrf.mxu1 }
 0x36e   :  { %885 = dma.done.wait [#allocation5], 16  }
 0x36f   :  { %886 = vsyncadd [#allocation5], 4294967280 }
 0x370   :  { %656 = vsyncpa [#allocation4], 1 }
 0x371   :  { %657 = vsyncpa [#allocation7], 1 }
 0x372   :  { %658 = vsyncpa [#allocation5], 1 }

</bundles_post_ra>
